<compile_context>
chip_gen: v7x
topology: tpu7x:2x2x1
jax: 0.10.0
libtpu: 0.0.40
codegen_flags: <defaults>
</compile_context>

<pallas_src>
import jax
import jax.numpy as jnp
from jax.experimental import pallas as pl
from jax.experimental.pallas import tpu as pltpu


def _linear_kernel(x_ref, w_ref, b_ref, o_ref):
    # x_ref: [B, F], w_ref: [O, F] (PyTorch layout), b_ref: [1, O], o_ref: [B, O]
    acc = jax.lax.dot_general(
        x_ref[...], w_ref[...],
        dimension_numbers=(((1,), (1,)), ((), ())),   # contract F of x with F of W
        preferred_element_type=jnp.float32,
    )
    o_ref[...] = (acc + b_ref[...]).astype(o_ref.dtype)


def logistic_regression_forward(x, weight, bias):
    """x: [B, C, H, W] (or any [B, ...]); weight: [O, F]; bias: [O]."""
    B = x.shape[0]
    x2d = x.reshape(B, -1)          # torch.flatten(x, 1) — layout plumbing, no copy
    O = weight.shape[0]
    b2d = bias.reshape(1, O)        # 2-D so it broadcasts over the batch rows

    return pl.pallas_call(
        _linear_kernel,
        out_shape=jax.ShapeDtypeStruct((B, O), x.dtype),
        in_specs=[
            pl.BlockSpec(memory_space=pltpu.MemorySpace.VMEM),  # x2d   [B, F]
            pl.BlockSpec(memory_space=pltpu.MemorySpace.VMEM),  # W     [O, F]
            pl.BlockSpec(memory_space=pltpu.MemorySpace.VMEM),  # bias  [1, O]
        ],
        out_specs=pl.BlockSpec(memory_space=pltpu.MemorySpace.VMEM),
    )(x2d, weight, b2d)


# jit the wrapper once so reshape + pallas_call dispatch as a single XLA program.
logistic_regression_forward = jax.jit(logistic_regression_forward)


if __name__ == "__main__":
    # Small shapes consistent with the module: x = [2, 4, 16, 16] -> input_size=1024
    B, C, H, W = 2, 4, 16, 16
    input_size = C * H * W
    output_size = 10

    key = jax.random.PRNGKey(0)
    kx, kw, kb = jax.random.split(key, 3)

    x = jax.random.normal(kx, (B, C, H, W), dtype=jnp.float32)
    # Deterministic init mimicking nn.Linear's uniform(-1/sqrt(F), 1/sqrt(F))
    bound = 1.0 / (input_size ** 0.5)
    weight = jax.random.uniform(kw, (output_size, input_size),
                                dtype=jnp.float32, minval=-bound, maxval=bound)
    bias = jax.random.uniform(kb, (output_size,),
                              dtype=jnp.float32, minval=-bound, maxval=bound)

    out = logistic_regression_forward(x, weight, bias)
    out = jax.block_until_ready(out)

    # Sanity check against plain JAX reference.
    ref = x.reshape(B, -1) @ weight.T + bias
    assert out.shape == (B, output_size)
    assert jnp.allclose(out, ref, atol=1e-5, rtol=1e-5)

    print("KERNEL_OK")
</pallas_src>

<mosaic_0001>
module attributes {stable_mosaic.version = 11 : i64} {
  func.func @_linear_kernel(%arg0: memref<2x1024xf32, #tpu.memory_space<vmem>>, %arg1: memref<10x1024xf32, #tpu.memory_space<vmem>>, %arg2: memref<1x10xf32, #tpu.memory_space<vmem>>, %arg3: memref<2x10xf32, #tpu.memory_space<vmem>>) attributes {dimension_semantics = [], scalar_prefetch = 0 : i64, scratch_operands = 0 : i64, tpu.core_type = #tpu.core_type<tc>} {
    %c0 = arith.constant 0 : index
    %c0_0 = arith.constant 0 : index
    %0 = vector.load %arg0[%c0, %c0_0] : memref<2x1024xf32, #tpu.memory_space<vmem>>, vector<2x1024xf32>
    %c0_1 = arith.constant 0 : index
    %c0_2 = arith.constant 0 : index
    %1 = vector.load %arg1[%c0_1, %c0_2] : memref<10x1024xf32, #tpu.memory_space<vmem>>, vector<10x1024xf32>
    %cst = arith.constant dense<0.000000e+00> : vector<2x10xf32>
    %2 = tpu.matmul %0, %1, %cst {dimension_numbers = #tpu.dot_dimension_numbers<[1], [1], [0], [0], [0, 0, 1, 0], [], []>} : vector<2x1024xf32>, vector<10x1024xf32>, vector<2x10xf32> -> vector<2x10xf32>
    %c0_3 = arith.constant 0 : index
    %c0_4 = arith.constant 0 : index
    %3 = vector.load %arg2[%c0_3, %c0_4] : memref<1x10xf32, #tpu.memory_space<vmem>>, vector<1x10xf32>
    %4 = vector.broadcast %3 : vector<1x10xf32> to vector<2x10xf32>
    %5 = arith.addf %2, %4 : vector<2x10xf32>
    %c0_5 = arith.constant 0 : index
    %c0_6 = arith.constant 0 : index
    %6 = vector.load %arg3[%c0_5, %c0_6] : memref<2x10xf32, #tpu.memory_space<vmem>>, vector<2x10xf32>
    tpu.vector_store %arg3[%c0_5, %c0_6], %5 {strides = array<i32>} : memref<2x10xf32, #tpu.memory_space<vmem>>, vector<2x10xf32>,
    return
  }
}

</mosaic_0001>

<bundles_post_ra>
// kernel: logistic_regression_forward.1
= control target key start
LH: loop header
LB: loop body
LE: loop exit
PB: predicated region body
PF: predicated region fallthrough
CT: control target
= control target key end

     0   :  { %v46_v3 = vlaneseq  ;;  %v431_v8 = vmov 1983009808   ;;  %s522_s0 = inlined_call_operand.vmem [shape: f32[2,1024], index: 0, kind: input, shape index: {}]   ;;  %s523_s1 = inlined_call_operand.vmem [shape: f32[10,1024], index: 1, kind: input, shape index: {}]   ;;  %s524_s2 = inlined_call_operand.vmem [shape: f32[1,10], index: 2, kind: input, shape index: {}]   ;;  %s525_s3 = inlined_call_operand.hbm [shape: f32[2,10], index: 3, kind: output, shape index: {}]  }
   0x1   :  { %v18_v0 = vld [vmem:[%s523_s1 + $0x8] sm:$0xff]  ;;  %v17_v2 = vld [vmem:[%s523_s1] sm:$0xff]  ;;  %v44_v9 = vunpack.c.l.s4 %v431_v8  ;;  %v20_v19 = vld [vmem:[%s523_s1 + $0x18] sm:$0xff] }
   0x2   :  { %v26_v1 = vld [vmem:[%s523_s1 + $0x48] sm:$0x3]  ;;  %v25_v5 = vld [vmem:[%s523_s1 + $0x40] sm:$0x3]  ;;  %v47_v15 = vshrl.u32 %v46_v3, 7  ;;  %v24_v24 = vld [vmem:[%s523_s1 + $0x38] sm:$0xff] }
   0x3   :  { %v381_v4 = vpack.c.bf16 %v26_v1, %v18_v0  ;;  %v22_v6 = vld [vmem:[%s523_s1 + $0x28] sm:$0xff]  ;;  %v383_v10 = vpack.c.bf16 %v25_v5, %v17_v2  ;;  %v21_v12 = vld [vmem:[%s523_s1 + $0x20] sm:$0xff]  ;;  %v45_v18 = vunpack.c.0.s8 %v44_v9  ;;  %v28_v20 = vld [vmem:[%s523_s1 + $0x58] sm:$0x3] }
   0x4   :  { %v30_v7 = vld [vmem:[%s523_s1 + $0x68] sm:$0x3]  ;;  %v29_v13 = vld [vmem:[%s523_s1 + $0x60] sm:$0x3]  ;;  %v385_v22 = vpack.c.bf16 %v28_v20, %v20_v19  ;;  %v19_v26 = vld [vmem:[%s523_s1 + $0x10] sm:$0xff] }
   0x5   :  { %v389_v11 = vpack.c.bf16 %v30_v7, %v22_v6  ;;  %v15_v14 = vld [vmem:[%s522_s0] sm:$0xff]  ;;  %382 = vmatprep.subr.bf16.mxu1 %v381_v4  ;;  %v391_v16 = vpack.c.bf16 %v29_v13, %v21_v12  ;;  %v16_v21 = vld [vmem:[%s522_s0 + $0x8] sm:$0xff]  ;;  %v48_v25 = vsub.s32 %v45_v18, %v47_v15  ;;  %v27_v27 = vld [vmem:[%s523_s1 + $0x50] sm:$0x3] }
   0x6   :  { %v42_v17 = vcombine.high %v15_v14, %v15_v14  ;;  %384 = vmatpush1.bf16.xpose.msra.mxu1 %v383_v10  ;;  %v59_v23 = vcombine.high %v16_v21, %v16_v21  ;;  %v32_v28 = vld [vmem:[%s523_s1 + $0x78] sm:$0x3]  ;;  %v23_v30 = vld [vmem:[%s523_s1 + $0x30] sm:$0xff] }
   0x7   :  { %390 = vmatprep.subr.bf16.mxu0 %v389_v11  ;;  %386 = vmatprep.subr.bf16.mxu1 %v385_v22  ;;  %v393_v29 = vpack.c.bf16 %v32_v28, %v24_v24  ;;  %v31_v31 = vld [vmem:[%s523_s1 + $0x70] sm:$0x3] }
   0x8   :  { %392 = vmatpush1.bf16.xpose.msra.mxu0 %v391_v16 }
   0x9   :  { %8 = vsyncpa [#allocation3], 0  ;;  %v49_v32 = vrot.slane %v15_v14, %v48_v25  ;;  %v66_v33 = vrot.slane %v16_v21, %v48_v25  ;;  %v56_v34 = vrot.slane %v42_v17, %v48_v25  ;;  %v73_v35 = vrot.slane %v59_v23, %v48_v25  ;;  %394 = vmatprep.subr.bf16.mxu0 %v393_v29  ;;  %v380_v42 = vld [vmem:[%s524_s2] ss:$0 sm:$0xff]  ;;  %s432_s21 = smov [#allocation2]  }
   0xa   :  { %v387_v38 = vpack.c.bf16 %v27_v27, %v19_v26  ;;  %v395_v39 = vpack.c.bf16 %v31_v31, %v23_v30  ;;  %s372_s22 = sshll.u32 %s432_s21, 4  ;;  %vm364_vm0 = vcmask 74752   ;;  %s373_s22 = int_to_ptr.vmem [resolvable:$true] %s372_s22 }
   0xb   :  { %v57_v36 = vcombine.high %v49_v32, %v49_v32  ;;  %v74_v37 = vcombine.high %v66_v33, %v66_v33  ;;  %v58_v40 = vcombine.high %v56_v34, %v56_v34  ;;  %v75_v41 = vcombine.high %v73_v35, %v73_v35  ;;  %s407_s23 = scalar_lea.vmem %s373_s22, 32  ;;  %p412_p1 = scmp.lt.s32.totalorder %s373_s22, %s373_s22 }
   0xc   :  { %p408_p0 = scmp.ne.s32.totalorder %s373_s22, %s407_s23  ;;  %p413_p2 = scmp.lt.s32.totalorder %s407_s23, %s407_s23 }
   0xd   :  { %148 = vmatprep.mubr.f32.mxu1 %v57_v36  ;;  %288 = vmatprep.mubr.f32.mxu0 %v74_v37 }
   0xe   :  { %149 = vmatmul.mubr.f32.vlgmr.msra.gmra.mrb[0].mxu1 %v49_v32  ;;  %p414_p3 = por %p413_p2, %p412_p1 }
   0xf   :  { %289 = vmatmul.mubr.f32.vlgmr.msra.gmra.mrb[0].mxu0 %v66_v33  ;;  %388 = vmatpush1.bf16.xpose.msra.mxu1 %v387_v38 }
  0x10   :  { %396 = vmatpush1.bf16.xpose.msra.mxu0 %v395_v39  ;;  %218 = vmatprep.mubr.f32.mxu1 %v58_v40  ;;  %p415_p4 = pnand %p414_p3, %p408_p0 }
  0x11   :  { %358 = vmatprep.mubr.f32.mxu0 %v75_v41 }
  0x16   :  { %219 = vmatmul.mubr.f32.vlgmr.msra.gmra.mrb[0].mxu1 %v56_v34 }
  0x17   :  { %359 = vmatmul.mubr.f32.vlgmr.msra.gmra.mrb[0].mxu0 %v73_v35 }
  0xe9   :  { %v220_v43 = vpop.f32.mrb[0].mxu1 }
  0xea   :  { %v360_v44 = vpop.f32.mrb[0].mxu0  ;;  %v397_v45 = vadd.f32 %v380_v42, %v220_v43  ;;  %v222_v46 = vpop.f32.mrb[1].mxu1 }
  0xeb   :  { %v362_v47 = vpop.f32.mrb[1].mxu0 }
  0xec   :  { %v398_v48 = vadd.f32 %v397_v45, %v360_v44 }
  0xee   :  { %365 = vst.msk [vmem:[#allocation2] sm:$0x3] %vm364_vm0, %v398_v48 }
  0xef   :  { %418 = shalt.err (!%p415_p4)
}
  0xf0   :  { %s419_s25 = scalar_lea.hbm %s525_s3, 32 }
  0xf1   :  { %p420_p5 = scmp.ne.s32.totalorder %s525_s3, %s419_s25  ;;  %p423_p6 = scmp.lt.u32.totalorder %s419_s25, %s525_s3 }
  0xf3   :  { %p425_p7 = pnand %p423_p6, %p420_p5 }
  0xf5   :  { %428 = shalt.err (!%p425_p7)
}
  0xf6   :  { %375 = dma.vmem_to_hbm [thread:$0]  %s373_s22, 32, %s525_s3, [#allocation3]  }
  0xf7   :  { %429 = dma.done.wait [#allocation3], 32  }
  0xf8   :  { %430 = vsyncadd [#allocation3], 4294967264 }
  0xf9   :  { %379 = vsyncpa [#allocation3], 1 }

</bundles_post_ra>
